<compile_context>
chip_gen: v7x
topology: tpu7x:2x2x1
jax: 0.10.0
libtpu: 0.0.40
codegen_flags: <defaults>
</compile_context>

<pallas_src>
import functools

import jax
import jax.numpy as jnp
from jax.experimental import pallas as pl
from jax.experimental.pallas import tpu as pltpu


def _round_up(x, m):
    return ((x + m - 1) // m) * m


# ===========================================================================
# Path 1: whole-network fused kernel (primary path; used for the shipped
# tiny MLP where per-layer launches + HBM round-trips dominate wall clock).
# ===========================================================================
def _fused_mlp_kernel(*refs, n_layers):
    # refs = (c_smem, x, w0, b0, w1, b1, ..., w_{L-1}, b_{L-1}, out)
    c_ref = refs[0]
    x_ref = refs[1]
    o_ref = refs[-1]

    c = c_ref[0, 0]                       # Gauss center, SMEM scalar
    h = x_ref[...].astype(jnp.float32)
    for j in range(n_layers):             # unrolled at trace time
        w = refs[2 + 2 * j][...]
        b = refs[3 + 2 * j][...]
        h = jnp.dot(h, w, preferred_element_type=jnp.float32) + b
        if j != n_layers - 1:
            d = h - c
            h = jnp.exp(-10.0 * d * d)    # Gauss nonlinearity
    o_ref[...] = h.astype(o_ref.dtype)


def _fused_vmem_estimate_bytes(tm, dims):
    """Rough double-buffered VMEM footprint of the fused kernel."""
    w_b = 4 * sum(dims[j] * dims[j + 1] + dims[j + 1] for j in range(len(dims) - 1))
    io_b = 4 * tm * (dims[0] + dims[-1])
    act_b = 2 * 4 * tm * max(dims)        # live intermediate activations
    return 2 * (w_b + io_b) + act_b


def _fused_forward(x, params, c, *, tm):
    M, K0 = x.shape
    n_layers = len(params)
    dims = [K0] + [w.shape[1] for (w, _) in params]

    Mp = M if tm == M else _round_up(M, tm)
    xp = jnp.pad(x, ((0, Mp - M), (0, 0))) if Mp != M else x
    grid = (Mp // tm,)

    in_specs = [
        pl.BlockSpec(memory_space=pltpu.MemorySpace.SMEM),    # Gauss center
        pl.BlockSpec((tm, K0), lambda i: (i, 0)),             # input tile
    ]
    args = [jnp.asarray(c, jnp.float32).reshape(1, 1), xp.astype(jnp.float32)]
    for (w, b) in params:
        kj, nj = w.shape
        in_specs.append(pl.BlockSpec((kj, nj), lambda i: (0, 0)))   # full weight
        in_specs.append(pl.BlockSpec((1, nj), lambda i: (0, 0)))    # full bias
        args.append(w.astype(jnp.float32))
        args.append(b.reshape(1, nj).astype(jnp.float32))

    flops = sum(2 * Mp * dims[j] * dims[j + 1] for j in range(n_layers))
    trans = Mp * sum(dims[1:-1])
    bytes_accessed = 4 * (
        Mp * dims[0] + Mp * dims[-1]
        + sum(dims[j] * dims[j + 1] + dims[j + 1] for j in range(n_layers))
    )

    out = pl.pallas_call(
        functools.partial(_fused_mlp_kernel, n_layers=n_layers),
        out_shape=jax.ShapeDtypeStruct((Mp, dims[-1]), jnp.float32),
        grid_spec=pltpu.PrefetchScalarGridSpec(
            num_scalar_prefetch=0,
            grid=grid,
            in_specs=in_specs,
            out_specs=pl.BlockSpec((tm, dims[-1]), lambda i: (i, 0)),
        ),
        compiler_params=pltpu.CompilerParams(
            dimension_semantics=("parallel",),
        ),
        cost_estimate=pl.CostEstimate(
            flops=flops, transcendentals=trans, bytes_accessed=bytes_accessed
        ),
    )(*args)
    out = out.astype(x.dtype)
    return out[:M] if Mp != M else out


# ===========================================================================
# Path 2: tiled per-layer fallback for layers too large to keep resident in
# VMEM.  Accumulates directly into the resident f32 output block (no scratch),
# padded cdiv grid, fused bias + Gauss epilogue on the last k step.
# ===========================================================================
def _linear_gauss_kernel(x_ref, w_ref, b_ref, c_ref, o_ref, *, apply_act):
    k = pl.program_id(2)
    partial_sum = jnp.dot(x_ref[...], w_ref[...], preferred_element_type=jnp.float32)

    @pl.when(k == 0)
    def _():
        o_ref[...] = partial_sum          # first k-step: plain write (no zero-init)

    @pl.when(k > 0)
    def _():
        o_ref[...] += partial_sum

    @pl.when(k == pl.num_programs(2) - 1)
    def _():
        y = o_ref[...] + b_ref[...]       # (tm, tn) + (1, tn)
        if apply_act:
            d = y - c_ref[0, 0]
            y = jnp.exp(-10.0 * d * d)
        o_ref[...] = y


def _linear_gauss_tiled(x, w, b, c, *, apply_act, tm=256, tn=256, tk=512):
    M, K = x.shape
    Kw, N = w.shape
    assert K == Kw, (K, Kw)

    x = x.astype(jnp.float32)
    w = w.astype(jnp.float32)

    tm = min(tm, _round_up(M, 8))
    tn = min(tn, _round_up(N, 128))
    tk = min(tk, _round_up(K, 128))
    Mp, Np, Kp = _round_up(M, tm), _round_up(N, tn), _round_up(K, tk)

    xp = jnp.pad(x, ((0, Mp - M), (0, Kp - K))) if (Mp, Kp) != (M, K) else x
    wp = jnp.pad(w, ((0, Kp - K), (0, Np - N))) if (Kp, Np) != (K, N) else w
    bp = jnp.pad(b.reshape(1, N).astype(jnp.float32), ((0, 0), (0, Np - N)))
    c2 = jnp.asarray(c, jnp.float32).reshape(1, 1)

    grid = (Mp // tm, Np // tn, Kp // tk)

    cost = pl.CostEstimate(
        flops=2 * Mp * Np * Kp,
        transcendentals=Mp * Np if apply_act else 0,
        # x re-read per N tile, w re-read per M tile:
        bytes_accessed=4 * (Mp * Kp * (Np // tn) + Kp * Np * (Mp // tm) + Mp * Np + Np),
    )

    out = pl.pallas_call(
        functools.partial(_linear_gauss_kernel, apply_act=apply_act),
        out_shape=jax.ShapeDtypeStruct((Mp, Np), jnp.float32),
        grid_spec=pltpu.PrefetchScalarGridSpec(
            num_scalar_prefetch=0,
            grid=grid,
            in_specs=[
                pl.BlockSpec((tm, tk), lambda i, j, k: (i, k)),
                pl.BlockSpec((tk, tn), lambda i, j, k: (k, j)),
                pl.BlockSpec((1, tn), lambda i, j, k: (0, j)),
                pl.BlockSpec(memory_space=pltpu.MemorySpace.SMEM),
            ],
            out_specs=pl.BlockSpec((tm, tn), lambda i, j, k: (i, j)),
        ),
        compiler_params=pltpu.CompilerParams(
            dimension_semantics=("parallel", "parallel", "arbitrary"),
        ),
        cost_estimate=cost,
    )(xp, wp, bp, c2)
    return out[:M, :N]


# ===========================================================================
# DeepNN.forward: Linear -> Gauss -> ... -> Linear (no activation on last).
# ===========================================================================
def deepnn_forward(x, params, c, *, fused_vmem_budget_bytes=12 * 1024 * 1024):
    M, _ = x.shape
    dims = [x.shape[1]] + [w.shape[1] for (w, _) in params]
    tm = M if M <= 512 else 256

    if _fused_vmem_estimate_bytes(tm, dims) <= fused_vmem_budget_bytes:
        return _fused_forward(x, params, c, tm=tm)

    # Large layers: one tiled MXU kernel per Linear layer.
    n_layers = len(params)
    h = x.astype(jnp.float32)
    for j, (w, b) in enumerate(params):
        h = _linear_gauss_tiled(h, w, b, c, apply_act=(j != n_layers - 1))
    return h.astype(x.dtype)


def _reference_forward(x, params, c):
    h = x
    for j, (w, b) in enumerate(params):
        h = jnp.dot(h, w, precision=jax.lax.Precision.HIGHEST) + b
        if j != len(params) - 1:
            h = jnp.exp(-10.0 * (h - c) ** 2)
    return h


if __name__ == "__main__":
    # TODO(synk): DeepNN takes `nonlinearity` as an arbitrary module; this
    # implements the project's Gauss activation exp(-10*(x-c)^2). `aug` is
    # unused in forward().
    layers = [32, 64, 64, 16]      # small MLP: 3 Linear layers, Gauss in between
    batch = 8

    key = jax.random.PRNGKey(0)
    keys = jax.random.split(key, 1 + 2 * (len(layers) - 1))
    x = jax.random.normal(keys[0], (batch, layers[0]), dtype=jnp.float32)

    params = []
    for j in range(len(layers) - 1):
        fan_in = layers[j]
        w = jax.random.normal(
            keys[1 + 2 * j], (layers[j], layers[j + 1]), dtype=jnp.float32
        ) / jnp.sqrt(jnp.float32(fan_in))
        bb = jax.random.normal(
            keys[2 + 2 * j], (layers[j + 1],), dtype=jnp.float32
        ) * 0.1
        params.append((w, bb))

    c = jnp.float32(0.1)           # Gauss nonlinearity center parameter

    y = deepnn_forward(x, params, c)
    jax.block_until_ready(y)

    ref = _reference_forward(x, params, c)
    assert y.shape == (batch, layers[-1])
    assert jnp.allclose(y, ref, atol=1e-4, rtol=1e-4), float(jnp.max(jnp.abs(y - ref)))

    print("KERNEL_OK")
</pallas_src>

<mosaic_0001>
module attributes {stable_mosaic.version = 11 : i64} {
  func.func @_fused_mlp_kernel(%arg0: i32, %arg1: memref<1x1xf32, #tpu.memory_space<smem>>, %arg2: memref<8x32xf32, #tpu.memory_space<vmem>>, %arg3: memref<32x64xf32, #tpu.memory_space<vmem>>, %arg4: memref<1x64xf32, #tpu.memory_space<vmem>>, %arg5: memref<64x64xf32, #tpu.memory_space<vmem>>, %arg6: memref<1x64xf32, #tpu.memory_space<vmem>>, %arg7: memref<64x16xf32, #tpu.memory_space<vmem>>, %arg8: memref<1x16xf32, #tpu.memory_space<vmem>>, %arg9: memref<8x16xf32, #tpu.memory_space<vmem>>) attributes {dimension_semantics = [#tpu.dimension_semantics<parallel>], iteration_bounds = array<i64: 1>, scalar_prefetch = 0 : i64, scratch_operands = 0 : i64, tpu.core_type = #tpu.core_type<tc>, window_params = [{transform_indices = @transform_0, window_bounds = array<i64: 1, 1>}, {transform_indices = @transform_1, window_bounds = array<i64: 8, 32>}, {pipeline_mode = #tpu.pipeline_mode<synchronous>, transform_indices = @transform_2, window_bounds = array<i64: 32, 64>}, {pipeline_mode = #tpu.pipeline_mode<synchronous>, transform_indices = @transform_3, window_bounds = array<i64: 1, 64>}, {pipeline_mode = #tpu.pipeline_mode<synchronous>, transform_indices = @transform_4, window_bounds = array<i64: 64, 64>}, {pipeline_mode = #tpu.pipeline_mode<synchronous>, transform_indices = @transform_5, window_bounds = array<i64: 1, 64>}, {pipeline_mode = #tpu.pipeline_mode<synchronous>, transform_indices = @transform_6, window_bounds = array<i64: 64, 16>}, {pipeline_mode = #tpu.pipeline_mode<synchronous>, transform_indices = @transform_7, window_bounds = array<i64: 1, 16>}, {transform_indices = @transform_8, window_bounds = array<i64: 8, 16>}]} {
    %c0 = arith.constant 0 : index
    %c0_0 = arith.constant 0 : index
    %0 = memref.load %arg1[%c0, %c0_0] : memref<1x1xf32, #tpu.memory_space<smem>>
    %c0_1 = arith.constant 0 : index
    %c0_2 = arith.constant 0 : index
    %1 = vector.load %arg2[%c0_1, %c0_2] : memref<8x32xf32, #tpu.memory_space<vmem>>, vector<8x32xf32>
    %c0_3 = arith.constant 0 : index
    %c0_4 = arith.constant 0 : index
    %2 = vector.load %arg3[%c0_3, %c0_4] : memref<32x64xf32, #tpu.memory_space<vmem>>, vector<32x64xf32>
    %c0_5 = arith.constant 0 : index
    %c0_6 = arith.constant 0 : index
    %3 = vector.load %arg4[%c0_5, %c0_6] : memref<1x64xf32, #tpu.memory_space<vmem>>, vector<1x64xf32>
    %cst = arith.constant dense<0.000000e+00> : vector<8x64xf32>
    %4 = tpu.matmul %1, %2, %cst {dimension_numbers = #tpu.dot_dimension_numbers<[1], [0], [0], [1], [0, 0, 1, 1], [], []>} : vector<8x32xf32>, vector<32x64xf32>, vector<8x64xf32> -> vector<8x64xf32>
    %5 = vector.broadcast %3 : vector<1x64xf32> to vector<8x64xf32>
    %6 = arith.addf %4, %5 : vector<8x64xf32>
    %7 = vector.broadcast %0 : f32 to vector<8x64xf32>
    %8 = arith.subf %6, %7 : vector<8x64xf32>
    %cst_7 = arith.constant -1.000000e+01 : f32
    %9 = vector.broadcast %cst_7 : f32 to vector<8x64xf32>
    %10 = arith.mulf %9, %8 : vector<8x64xf32>
    %11 = arith.mulf %10, %8 : vector<8x64xf32>
    %12 = math.exp %11 : vector<8x64xf32>
    %c0_8 = arith.constant 0 : index
    %c0_9 = arith.constant 0 : index
    %13 = vector.load %arg5[%c0_8, %c0_9] : memref<64x64xf32, #tpu.memory_space<vmem>>, vector<64x64xf32>
    %c0_10 = arith.constant 0 : index
    %c0_11 = arith.constant 0 : index
    %14 = vector.load %arg6[%c0_10, %c0_11] : memref<1x64xf32, #tpu.memory_space<vmem>>, vector<1x64xf32>
    %cst_12 = arith.constant dense<0.000000e+00> : vector<8x64xf32>
    %15 = tpu.matmul %12, %13, %cst_12 {dimension_numbers = #tpu.dot_dimension_numbers<[1], [0], [0], [1], [0, 0, 1, 1], [], []>} : vector<8x64xf32>, vector<64x64xf32>, vector<8x64xf32> -> vector<8x64xf32>
    %16 = vector.broadcast %14 : vector<1x64xf32> to vector<8x64xf32>
    %17 = arith.addf %15, %16 : vector<8x64xf32>
    %18 = vector.broadcast %0 : f32 to vector<8x64xf32>
    %19 = arith.subf %17, %18 : vector<8x64xf32>
    %cst_13 = arith.constant -1.000000e+01 : f32
    %20 = vector.broadcast %cst_13 : f32 to vector<8x64xf32>
    %21 = arith.mulf %20, %19 : vector<8x64xf32>
    %22 = arith.mulf %21, %19 : vector<8x64xf32>
    %23 = math.exp %22 : vector<8x64xf32>
    %c0_14 = arith.constant 0 : index
    %c0_15 = arith.constant 0 : index
    %24 = vector.load %arg7[%c0_14, %c0_15] : memref<64x16xf32, #tpu.memory_space<vmem>>, vector<64x16xf32>
    %c0_16 = arith.constant 0 : index
    %c0_17 = arith.constant 0 : index
    %25 = vector.load %arg8[%c0_16, %c0_17] : memref<1x16xf32, #tpu.memory_space<vmem>>, vector<1x16xf32>
    %cst_18 = arith.constant dense<0.000000e+00> : vector<8x16xf32>
    %26 = tpu.matmul %23, %24, %cst_18 {dimension_numbers = #tpu.dot_dimension_numbers<[1], [0], [0], [1], [0, 0, 1, 1], [], []>} : vector<8x64xf32>, vector<64x16xf32>, vector<8x16xf32> -> vector<8x16xf32>
    %27 = vector.broadcast %25 : vector<1x16xf32> to vector<8x16xf32>
    %28 = arith.addf %26, %27 : vector<8x16xf32>
    %c0_19 = arith.constant 0 : index
    %c0_20 = arith.constant 0 : index
    %29 = vector.load %arg9[%c0_19, %c0_20] : memref<8x16xf32, #tpu.memory_space<vmem>>, vector<8x16xf32>
    tpu.vector_store %arg9[%c0_19, %c0_20], %28 {strides = array<i32>} : memref<8x16xf32, #tpu.memory_space<vmem>>, vector<8x16xf32>,
    return
  }
  func.func @transform_0(%arg0: i32) -> (i32, i32) {
    %c0_i32 = arith.constant 0 : i32
    %c0_i32_0 = arith.constant 0 : i32
    %c0_i32_1 = arith.constant 0 : i32
    return %c0_i32, %c0_i32_0 : i32, i32
  }
  func.func @transform_1(%arg0: i32) -> (i32, i32) {
    %c0_i32 = arith.constant 0 : i32
    %c0_i32_0 = arith.constant 0 : i32
    return %arg0, %c0_i32 : i32, i32
  }
  func.func @transform_2(%arg0: i32) -> (i32, i32) {
    %c0_i32 = arith.constant 0 : i32
    %c0_i32_0 = arith.constant 0 : i32
    %c0_i32_1 = arith.constant 0 : i32
    return %c0_i32, %c0_i32_0 : i32, i32
  }
  func.func @transform_3(%arg0: i32) -> (i32, i32) {
    %c0_i32 = arith.constant 0 : i32
    %c0_i32_0 = arith.constant 0 : i32
    %c0_i32_1 = arith.constant 0 : i32
    return %c0_i32, %c0_i32_0 : i32, i32
  }
  func.func @transform_4(%arg0: i32) -> (i32, i32) {
    %c0_i32 = arith.constant 0 : i32
    %c0_i32_0 = arith.constant 0 : i32
    %c0_i32_1 = arith.constant 0 : i32
    return %c0_i32, %c0_i32_0 : i32, i32
  }
  func.func @transform_5(%arg0: i32) -> (i32, i32) {
    %c0_i32 = arith.constant 0 : i32
    %c0_i32_0 = arith.constant 0 : i32
    %c0_i32_1 = arith.constant 0 : i32
    return %c0_i32, %c0_i32_0 : i32, i32
  }
  func.func @transform_6(%arg0: i32) -> (i32, i32) {
    %c0_i32 = arith.constant 0 : i32
    %c0_i32_0 = arith.constant 0 : i32
    %c0_i32_1 = arith.constant 0 : i32
    return %c0_i32, %c0_i32_0 : i32, i32
  }
  func.func @transform_7(%arg0: i32) -> (i32, i32) {
    %c0_i32 = arith.constant 0 : i32
    %c0_i32_0 = arith.constant 0 : i32
    %c0_i32_1 = arith.constant 0 : i32
    return %c0_i32, %c0_i32_0 : i32, i32
  }
  func.func @transform_8(%arg0: i32) -> (i32, i32) {
    %c0_i32 = arith.constant 0 : i32
    %c0_i32_0 = arith.constant 0 : i32
    return %arg0, %c0_i32 : i32, i32
  }
}

</mosaic_0001>

<bundles_post_ra>
// kernel: tpu_custom_call.1
= control target key start
LH: loop header
LB: loop body
LE: loop exit
PB: predicated region body
PF: predicated region fallthrough
CT: control target
= control target key end

     0   :  { %14 = vsyncpa [#allocation4], 0  ;;  %s658_s0 = inlined_call_operand.<no memory space> [shape: f32[1,1], index: 0, kind: input, shape index: {}]   ;;  %s659_s1 = inlined_call_operand.vmem [shape: f32[8,32], index: 1, kind: input, shape index: {}]   ;;  %s660_s2 = inlined_call_operand.hbm [shape: f32[32,64], index: 2, kind: input, shape index: {}]   ;;  %s661_s3 = inlined_call_operand.vmem [shape: f32[1,64], index: 3, kind: input, shape index: {}]   ;;  %s662_s4 = inlined_call_operand.vmem [shape: f32[64,64], index: 4, kind: input, shape index: {}]   ;;  %s663_s5 = inlined_call_operand.vmem [shape: f32[1,64], index: 5, kind: input, shape index: {}]   ;;  %s664_s6 = inlined_call_operand.vmem [shape: f32[64,16], index: 6, kind: input, shape index: {}]   ;;  %s665_s7 = inlined_call_operand.vmem [shape: f32[1,16], index: 7, kind: input, shape index: {}]   ;;  %s666_s8 = inlined_call_operand.hbm [shape: f32[8,16], index: 8, kind: output, shape index: {}]  }
   0x1   :  { %15 = vsyncpa [#allocation5], 0  ;;  %s504_s27 = smov [#allocation3]   ;;  %s456_s9 = scalar_lea.hbm %s660_s2, 512 }
   0x2   :  { %s25_s28 = sshll.u32 %s504_s27, 4  ;;  %p457_p0 = scmp.ne.s32.totalorder %s660_s2, %s456_s9  ;;  %s26_s28 = int_to_ptr.vmem [resolvable:$true] %s25_s28 }
   0x3   :  { %p460_p1 = scmp.lt.u32.totalorder %s456_s9, %s660_s2 }
   0x5   :  { %p462_p2 = pnand %p460_p1, %p457_p0 }
   0x7   :  { %465 = shalt.err (!%p462_p2)
}
   0x8   :  { %s466_s14 = scalar_lea.vmem %s26_s28, 512  ;;  %p471_p4 = scmp.lt.s32.totalorder %s26_s28, %s26_s28 }
   0x9   :  { %p467_p3 = scmp.ne.s32.totalorder %s26_s28, %s466_s14  ;;  %p472_p5 = scmp.lt.s32.totalorder %s466_s14, %s466_s14 }
   0xb   :  { %p473_p6 = por %p472_p5, %p471_p4 }
   0xd   :  { %p474_p7 = pnand %p473_p6, %p467_p3 }
   0xf   :  { %477 = shalt.err (!%p474_p7)
}
  0x10   :  { %s505_s15 = smov 128   ;;  %s506_s16 = smov 8  }
  0x11   :  { %31 = dma.hbm_to_vmem [thread:$0]  %s660_s2, 512, %s26_s28, [#allocation4], %s505_s15, %s505_s15, %s506_s16  }
  0x12   :  { %500 = dma.done.wait [#allocation4], 512  }
  0x13   :  { %501 = vsyncadd [#allocation4], 4294966784  ;;  %v507_v0 = vmov 0.0|0.0   ;;  %vm508_vm0 = vmmov 0   ;;  %v509_v1 = vmov 0.0   ;;  %v47_v2 = vld [vmem:[#allocation3] sm:$0xff]  ;;  %v132_v23 = vstv %s658_s0 }
  0x14   :  { %415 = vmatprep.subr.bf16.mxu0 %v507_v0  ;;  %374 = vmatprep.mubr.msk.f32.mxu0 %vm508_vm0, %v509_v1  ;;  %v48_v3 = vld [vmem:[#allocation3 + $0x8] sm:$0xff]  ;;  %v49_v4 = vld [vmem:[#allocation3 + $0x10] sm:$0xff]  ;;  %v50_v6 = vld [vmem:[#allocation3 + $0x18] sm:$0xff]  ;;  %vm58_vm1 = vcmask 261120   ;;  %vm153_vm2 = vcmask 523264   ;;  %s510_s9 = smov [#allocation6]  }
  0x15   :  { %421 = vmatprep.subr.bf16.mxu1 %v507_v0  ;;  %393 = vmatprep.mubr.msk.f32.mxu1 %vm508_vm0, %v509_v1  ;;  %v416_v5 = vpack.c.bf16 %v48_v3, %v47_v2  ;;  %v419_v7 = vpack.c.bf16 %v50_v6, %v49_v4  ;;  %v46_v8 = vld [vmem:[%s659_s1] sm:$0xff]  ;;  %v139_v10 = vld [vmem:[%s662_s4 + $0x8] sm:$0xff]  ;;  %v140_v12 = vld [vmem:[%s662_s4 + $0x10] sm:$0xff]  ;;  %s328_s10 = sshll.u32 %s510_s9, 4  ;;  %vm320_vm3 = vcmask 130048   ;;  %s329_s10 = int_to_ptr.vmem [resolvable:$true] %s328_s10 }
  0x16   :  { %v138_v9 = vld [vmem:[%s662_s4] sm:$0xff]  ;;  %v141_v13 = vld [vmem:[%s662_s4 + $0x18] sm:$0xff]  ;;  %v143_v16 = vld [vmem:[%s662_s4 + $0x28] sm:$0xff]  ;;  %p483_p9 = scmp.lt.s32.totalorder %s329_s10, %s329_s10 }
  0x17   :  { %417 = vmatpush3.bf16.msra.mxu0 %v416_v5  ;;  %v422_v11 = vpack.c.bf16 %v139_v10, %v138_v9  ;;  %v425_v14 = vpack.c.bf16 %v141_v13, %v140_v12  ;;  %v142_v15 = vld [vmem:[%s662_s4 + $0x20] sm:$0xff]  ;;  %v144_v18 = vld [vmem:[%s662_s4 + $0x30] sm:$0xff]  ;;  %v145_v19 = vld [vmem:[%s662_s4 + $0x38] sm:$0xff] }
  0x18   :  { %418 = vmatprep.subr.bf16.mxu0 %v507_v0  ;;  %v428_v17 = vpack.c.bf16 %v143_v16, %v142_v15  ;;  %v431_v20 = vpack.c.bf16 %v145_v19, %v144_v18  ;;  %v337_v21 = vld [vmem:[%s661_s3] ss:$0 sm:$0xff]  ;;  %v233_v32 = vld [vmem:[%s664_s6 + $0x8] sm:$0xff]  ;;  %v234_v34 = vld [vmem:[%s664_s6 + $0x10] sm:$0xff] }
  0x19   :  { %423 = vmatpush3.bf16.msra.mxu1 %v422_v11  ;;  %v232_v31 = vld [vmem:[%s664_s6] sm:$0xff]  ;;  %v235_v35 = vld [vmem:[%s664_s6 + $0x18] sm:$0xff]  ;;  %v237_v38 = vld [vmem:[%s664_s6 + $0x28] sm:$0xff] }
  0x1a   :  { %424 = vmatprep.subr.bf16.mxu1 %v507_v0  ;;  %v434_v33 = vpack.c.bf16 %v233_v32, %v232_v31  ;;  %v437_v36 = vpack.c.bf16 %v235_v35, %v234_v34  ;;  %v236_v37 = vld [vmem:[%s664_s6 + $0x20] sm:$0xff]  ;;  %v238_v40 = vld [vmem:[%s664_s6 + $0x30] sm:$0xff]  ;;  %v239_v41 = vld [vmem:[%s664_s6 + $0x38] sm:$0xff] }
  0x1b   :  { %420 = vmatpush3.bf16.msra.mxu0 %v419_v7  ;;  %v440_v39 = vpack.c.bf16 %v237_v38, %v236_v37  ;;  %v443_v42 = vpack.c.bf16 %v239_v41, %v238_v40  ;;  %v339_v43 = vld [vmem:[%s663_s5] ss:$0 sm:$0xff]  ;;  %s478_s5 = scalar_lea.vmem %s329_s10, 128 }
  0x1c   :  { %433 = vmatprep.subr.bf16.mxu0 %v507_v0  ;;  %v341_v52 = vld [vmem:[%s665_s7] ss:$0 sm:$0xff]  ;;  %p479_p8 = scmp.ne.s32.totalorder %s329_s10, %s478_s5  ;;  %p484_p10 = scmp.lt.s32.totalorder %s478_s5, %s478_s5 }
  0x1d   :  { %426 = vmatpush3.bf16.msra.mxu1 %v425_v14 }
  0x1e   :  { %375 = vmatmul.mubr.msk.f32.vlgmr.msra.gmra.mrb[0].mxu0 %vm58_vm1, %v46_v8  ;;  %427 = vmatprep.subr.bf16.mxu1 %v507_v0  ;;  %p485_p11 = por %p484_p10, %p483_p9 }
  0x1f   :  { %412 = vmatprep.mubr.msk.f32.mxu0 %vm508_vm0, %v509_v1  ;;  %435 = vmatpush3.bf16.msra.mxu0 %v434_v33 }
  0x20   :  { %436 = vmatprep.subr.bf16.mxu0 %v507_v0  ;;  %p486_p12 = pnand %p485_p11, %p479_p8 }
  0x21   :  { %429 = vmatpush3.bf16.msra.mxu1 %v428_v17 }
  0x22   :  { %430 = vmatprep.subr.bf16.mxu1 %v507_v0 }
  0x23   :  { %438 = vmatpush3.bf16.msra.mxu0 %v437_v36 }
  0x24   :  { %439 = vmatprep.subr.bf16.mxu0 %v507_v0 }
  0x25   :  { %432 = vmatpush3.bf16.msra.mxu1 %v431_v20 }
  0x27   :  { %441 = vmatpush3.bf16.msra.mxu0 %v440_v39 }
  0x28   :  { %442 = vmatprep.subr.bf16.mxu0 %v507_v0 }
  0x2b   :  { %444 = vmatpush3.bf16.msra.mxu0 %v443_v42 }
  0xf1   :  { %v128_v22 = vpop.f32.mrb[0].mxu0 }
  0xf2   :  { %v129_v24 = vadd.f32 %v337_v21, %v128_v22  ;;  %v376_v25 = vpop.f32.mrb[1].mxu0 }
  0xf4   :  { %v133_v26 = vsub.f32 %v129_v24, %v132_v23 }
  0xf6   :  { %v134_v27 = vmul.f32 -10.0, %v133_v26 }
  0xf8   :  { %v135_v28 = vmul.f32 %v134_v27, %v133_v26 }
  0xfa   :  { %v136_v29 = vmul.f32 1.442695, %v135_v28 }
  0xfc   :  { %452 = vpow2.f32 %v136_v29 }
 0x106   :  { %v453_v30 = vpop.eup %452 }
 0x107   :  { %394 = vmatmul.mubr.msk.f32.vlgmr.msra.gmra.mrb[0].mxu1 %vm153_vm2, %v453_v30 }
 0x1da   :  { %v223_v44 = vpop.f32.mrb[0].mxu1 }
 0x1db   :  { %v224_v45 = vadd.f32 %v339_v43, %v223_v44  ;;  %v395_v46 = vpop.f32.mrb[1].mxu1 }
 0x1dd   :  { %v227_v47 = vsub.f32 %v224_v45, %v132_v23 }
 0x1df   :  { %v228_v48 = vmul.f32 -10.0, %v227_v47 }
 0x1e1   :  { %v229_v49 = vmul.f32 %v228_v48, %v227_v47 }
 0x1e3   :  { %v230_v50 = vmul.f32 1.442695, %v229_v49 }
 0x1e5   :  { %454 = vpow2.f32 %v230_v50 }
 0x1ef   :  { %v455_v51 = vpop.eup %454 }
 0x1f0   :  { %413 = vmatmul.mubr.msk.f32.vlgmr.msra.gmra.mrb[2].mxu0 %vm153_vm2, %v455_v51 }
 0x2c3   :  { %v316_v53 = vpop.f32.mrb[2].mxu0 }
 0x2c4   :  { %v317_v54 = vadd.f32 %v341_v52, %v316_v53  ;;  %v414_v55 = vpop.f32.mrb[3].mxu0 }
 0x2c6   :  { %321 = vst.msk [vmem:[#allocation6] sm:$0xff] %vm320_vm3, %v317_v54 }
 0x2c7   :  { %489 = shalt.err (!%p486_p12)
}
 0x2c8   :  { %s490_s13 = scalar_lea.hbm %s666_s8, 128 }
 0x2c9   :  { %p491_p13 = scmp.ne.s32.totalorder %s666_s8, %s490_s13  ;;  %p494_p0 = scmp.lt.u32.totalorder %s490_s13, %s666_s8 }
 0x2cb   :  { %p496_p1 = pnand %p494_p0, %p491_p13 }
 0x2cd   :  { %499 = shalt.err (!%p496_p1)
}
 0x2ce   :  { %331 = dma.vmem_to_hbm [thread:$0]  %s329_s10, 128, %s666_s8, [#allocation5]  }
 0x2cf   :  { %502 = dma.done.wait [#allocation5], 128  }
 0x2d0   :  { %503 = vsyncadd [#allocation5], 4294967168 }
 0x2d1   :  { %335 = vsyncpa [#allocation4], 1 }
 0x2d2   :  { %336 = vsyncpa [#allocation5], 1 }

</bundles_post_ra>
